<compile_context>
chip_gen: v5e
topology: v5e:2x2
jax: 0.10.0
libtpu: 0.0.40
codegen_flags: <defaults>
</compile_context>

<pallas_src>
import math
import functools

import jax
import jax.numpy as jnp
from jax.experimental import pallas as pl
from jax.experimental.pallas import tpu as pltpu

D_MODEL = 64
DROPOUT_P = 0.2
MAX_LEN = 5000

# Integer dropout threshold: drop iff hash < _DROP_THRESH  (P(drop) ~= p).
# Clamp to 2^32-1 so p == 1.0 cannot wrap to 0 in uint32 (scale=0 guard below
# also covers that degenerate case).
_DROP_THRESH = min(int(round(DROPOUT_P * (1 << 32))), (1 << 32) - 1)

# ~4 MiB per x tile: on the measured HBM-roofline plateau, and 2x in + 2x out
# double buffers plus elementwise temporaries stay well under 40 MiB scoped VMEM
# (safe on v7x's 64 MiB physical VMEM; trivially safe on v5e/v6e's 128 MiB).
_TILE_BYTES = 4 * 1024 * 1024
_VMEM_LIMIT = 40 * 1024 * 1024


def build_pe_table(max_len: int, d_model: int) -> jnp.ndarray:
    """Deterministic sinusoidal table, identical to the PyTorch __init__."""
    position = jnp.arange(max_len, dtype=jnp.float32)[:, None]            # (L, 1)
    div_term = jnp.exp(
        jnp.arange(0, d_model, 2, dtype=jnp.float32) * (-math.log(10000.0) / d_model)
    )                                                                     # (ceil(D/2),)
    ang = position * div_term                                             # (L, ceil(D/2))
    pe = jnp.zeros((max_len, d_model), dtype=jnp.float32)
    pe = pe.at[:, 0::2].set(jnp.sin(ang))
    if d_model % 2 == 0:
        pe = pe.at[:, 1::2].set(jnp.cos(ang))
    else:
        pe = pe.at[:, 1::2].set(jnp.cos(ang[:, :-1]))
    return pe                                                             # (L, D)


def _hash_u32(h):
    """2-round integer finalizer: enough avalanche for dropout, pure VPU int ops."""
    h = h * jnp.uint32(0x9E3779B1)
    h = h ^ (h >> 16)
    h = h * jnp.uint32(0x7FEB352D)
    h = h ^ (h >> 15)
    return h


def _make_kernel(p: float, training: bool, pe_factor: int, ts: int, bd: int):
    scale = 1.0 / (1.0 - p) if p < 1.0 else 0.0

    def kernel(seed_ref, x_ref, pe_ref, o_ref):
        # pe tile is lane-aligned (ts, PEW); broadcast over remaining batch reps.
        if pe_factor > 1:
            pe_full = jnp.tile(pe_ref[...], (1, pe_factor))       # (ts, B*D)
        else:
            pe_full = pe_ref[...]                                 # already (ts, B*D)
        y = x_ref[...] + pe_full                                  # (ts, B*D)

        if training and p > 0.0:
            # Counter-based dropout mask keyed on the GLOBAL flat element index,
            # so every grid tile gets an independent, grid-invariant mask.
            seed = seed_ref[0].astype(jnp.uint32)
            base = (pl.program_id(0) * ts).astype(jnp.uint32) * jnp.uint32(bd)
            rows = jax.lax.broadcasted_iota(jnp.int32, (ts, bd), 0).astype(jnp.uint32)
            cols = jax.lax.broadcasted_iota(jnp.int32, (ts, bd), 1).astype(jnp.uint32)
            lin = rows * jnp.uint32(bd) + cols + base
            h = _hash_u32(lin ^ seed)
            keep = h >= jnp.uint32(_DROP_THRESH)                  # P(keep) = 1 - p
            o_ref[...] = jnp.where(keep, y * scale, 0.0).astype(o_ref.dtype)
        else:
            o_ref[...] = y.astype(o_ref.dtype)

    return kernel


@functools.partial(jax.jit, static_argnames=("training",))
def positional_encoding(x, pe_table, seed, *, training=True):
    """x: (S, B, D) float32; pe_table: (max_len, D); seed: int32 scalar."""
    S, B, D = x.shape
    BD = B * D
    x2 = x.reshape(S, BD)                 # free contiguous reshape -> lane-dense last dim
    seed_arr = jnp.asarray(seed, dtype=jnp.int32).reshape((1,))

    # Lane-align the pe tile: replicate pe along lanes up to width 128 in the
    # wrapper (negligible HBM traffic) so the per-step pe DMA is dense and the
    # in-kernel broadcast factor shrinks from B to B // rep.
    if D < 128 and (128 % D == 0) and (B % (128 // D) == 0):
        rep = 128 // D
    else:
        rep = 1
    PEW = D * rep
    pe2 = pe_table[:S]                    # (S, D) -- matches self.pe[:x.size(0), :]
    if rep > 1:
        pe2 = jnp.tile(pe2, (1, rep))     # (S, PEW)
    pe_factor = B // rep                  # remaining in-kernel broadcast factor

    # Sequence-tile size: sized by bytes only (multiple of 8 rows, ~4 MiB x tile).
    bytes_per_row = BD * 4
    rows_fit = max(8, ((_TILE_BYTES // max(1, bytes_per_row)) // 8) * 8)
    if S <= rows_fit:
        if S >= 16:
            # Whole sequence fits in one tile: split in two so v7x's second
            # TensorCore gets work (no-op cost on single-TC v5e/v6e).
            TS = min(S, ((-(-S // 2)) + 7) // 8 * 8)
        else:
            TS = S                        # block == full dim is always legal
    else:
        TS = rows_fit
    grid = (pl.cdiv(S, TS),)

    kernel = _make_kernel(DROPOUT_P, training, pe_factor, TS, BD)
    grid_spec = pltpu.PrefetchScalarGridSpec(
        num_scalar_prefetch=1,            # seed lives in SMEM
        grid=grid,
        in_specs=[
            pl.BlockSpec((TS, BD), lambda i, seed_ref: (i, 0)),   # x tile
            pl.BlockSpec((TS, PEW), lambda i, seed_ref: (i, 0)),  # lane-aligned pe tile
        ],
        out_specs=pl.BlockSpec((TS, BD), lambda i, seed_ref: (i, 0)),
    )
    out2 = pl.pallas_call(
        kernel,
        out_shape=jax.ShapeDtypeStruct((S, BD), x.dtype),
        grid_spec=grid_spec,
        compiler_params=pltpu.CompilerParams(
            dimension_semantics=("parallel",),      # independent tiles; shard on v7x megacore
            vmem_limit_bytes=_VMEM_LIMIT,
        ),
    )(seed_arr, x2, pe2)
    return out2.reshape(S, B, D)


if __name__ == "__main__":
    S, B, D = 8, 2, D_MODEL               # B*D = 128 -> lane-dense
    key = jax.random.PRNGKey(0)
    x = jax.random.normal(key, (S, B, D), dtype=jnp.float32)

    pe_table = build_pe_table(MAX_LEN, D_MODEL)
    seed = jnp.int32(0)

    # training mode (dropout active, like the PyTorch module in train())
    out_train = jax.block_until_ready(positional_encoding(x, pe_table, seed, training=True))

    # eval mode (dropout is identity) -> must equal x + pe[:S]
    out_eval = jax.block_until_ready(positional_encoding(x, pe_table, seed, training=False))
    ref = x + pe_table[:S][:, None, :]
    assert jnp.allclose(out_eval, ref, atol=1e-6), "eval-mode mismatch vs reference"

    # training mode: dropped elements are exactly zero, kept ones scaled by 1/(1-p)
    kept = out_train != 0.0
    assert jnp.allclose(
        jnp.where(kept, out_train, 0.0),
        jnp.where(kept, ref / (1.0 - DROPOUT_P), 0.0),
        atol=1e-5,
    ), "training-mode scaling mismatch"
    n_drop = int(jnp.sum(~kept))
    assert 0 < n_drop < kept.size, "dropout mask degenerate"

    # a larger shape exercises the multi-tile / partial-last-block path
    S2, B2 = 300, 4
    x_big = jax.random.normal(jax.random.PRNGKey(1), (S2, B2, D), dtype=jnp.float32)
    out_big = jax.block_until_ready(positional_encoding(x_big, pe_table, seed, training=False))
    ref_big = x_big + pe_table[:S2][:, None, :]
    assert jnp.allclose(out_big, ref_big, atol=1e-6), "multi-tile eval mismatch"

    print("KERNEL_OK")
</pallas_src>

<mosaic_0001>
module attributes {stable_mosaic.version = 11 : i64} {
  func.func @kernel(%arg0: i32, %arg1: memref<1xi32, #tpu.memory_space<smem>>, %arg2: memref<8x128xf32, #tpu.memory_space<vmem>>, %arg3: memref<8x128xf32, #tpu.memory_space<vmem>>, %arg4: memref<8x128xf32, #tpu.memory_space<vmem>>) attributes {dimension_semantics = [#tpu.dimension_semantics<parallel>], iteration_bounds = array<i64: 1>, scalar_prefetch = 1 : i64, scratch_operands = 0 : i64, tpu.core_type = #tpu.core_type<tc>, window_params = [{transform_indices = @transform_0, window_bounds = array<i64: 8, 128>}, {transform_indices = @transform_1, window_bounds = array<i64: 8, 128>}, {transform_indices = @transform_2, window_bounds = array<i64: 8, 128>}]} {
    %c0 = arith.constant 0 : index
    %c0_0 = arith.constant 0 : index
    %0 = vector.load %arg3[%c0, %c0_0] : memref<8x128xf32, #tpu.memory_space<vmem>>, vector<8x128xf32>
    %c0_1 = arith.constant 0 : index
    %c0_2 = arith.constant 0 : index
    %1 = vector.load %arg2[%c0_1, %c0_2] : memref<8x128xf32, #tpu.memory_space<vmem>>, vector<8x128xf32>
    %2 = arith.addf %1, %0 : vector<8x128xf32>
    %c0_3 = arith.constant 0 : index
    %3 = memref.load %arg1[%c0_3] : memref<1xi32, #tpu.memory_space<smem>>
    %c8_i32 = arith.constant 8 : i32
    %4 = arith.muli %arg0, %c8_i32 : i32
    %c128_i32 = arith.constant 128 : i32
    %5 = arith.muli %4, %c128_i32 : i32
    %6 = tpu.iota {dimensions = array<i32: 0>} : vector<8x128xi32>
    %7 = tpu.iota {dimensions = array<i32: 1>} : vector<8x128xi32>
    %c128_i32_4 = arith.constant 128 : i32
    %8 = vector.broadcast %c128_i32_4 : i32 to vector<8x128xi32>
    %9 = arith.muli %6, %8 : vector<8x128xi32>
    %10 = arith.addi %9, %7 : vector<8x128xi32>
    %11 = vector.broadcast %5 : i32 to vector<8x128xi32>
    %12 = arith.addi %10, %11 : vector<8x128xi32>
    %13 = vector.broadcast %3 : i32 to vector<8x128xi32>
    %14 = arith.xori %12, %13 : vector<8x128xi32>
    %c-1640531535_i32 = arith.constant -1640531535 : i32
    %15 = vector.broadcast %c-1640531535_i32 : i32 to vector<8x128xi32>
    %16 = arith.muli %14, %15 : vector<8x128xi32>
    %c16_i32 = arith.constant 16 : i32
    %17 = vector.broadcast %c16_i32 : i32 to vector<8x128xi32>
    %18 = arith.shrui %16, %17 : vector<8x128xi32>
    %19 = arith.xori %16, %18 : vector<8x128xi32>
    %c2146121005_i32 = arith.constant 2146121005 : i32
    %20 = vector.broadcast %c2146121005_i32 : i32 to vector<8x128xi32>
    %21 = arith.muli %19, %20 : vector<8x128xi32>
    %c15_i32 = arith.constant 15 : i32
    %22 = vector.broadcast %c15_i32 : i32 to vector<8x128xi32>
    %23 = arith.shrui %21, %22 : vector<8x128xi32>
    %24 = arith.xori %21, %23 : vector<8x128xi32>
    %c858993459_i32 = arith.constant 858993459 : i32
    %25 = vector.broadcast %c858993459_i32 : i32 to vector<8x128xi32>
    %26 = arith.cmpi uge, %24, %25 : vector<8x128xi32>
    %cst = arith.constant 1.250000e+00 : f32
    %27 = vector.broadcast %cst : f32 to vector<8x128xf32>
    %28 = arith.mulf %2, %27 : vector<8x128xf32>
    %cst_5 = arith.constant 0.000000e+00 : f32
    %29 = vector.broadcast %cst_5 : f32 to vector<8x128xf32>
    %30 = arith.select %26, %28, %29 : vector<8x128xi1>, vector<8x128xf32>
    %c0_6 = arith.constant 0 : index
    %c0_7 = arith.constant 0 : index
    %31 = vector.load %arg4[%c0_6, %c0_7] : memref<8x128xf32, #tpu.memory_space<vmem>>, vector<8x128xf32>
    tpu.vector_store %arg4[%c0_6, %c0_7], %30 {strides = array<i32>} : memref<8x128xf32, #tpu.memory_space<vmem>>, vector<8x128xf32>,
    return
  }
  func.func @transform_0(%arg0: i32, %arg1: memref<1xi32, #tpu.memory_space<smem>>) -> (i32, i32) {
    %c0_i32 = arith.constant 0 : i32
    %c0_i32_0 = arith.constant 0 : i32
    return %arg0, %c0_i32 : i32, i32
  }
  func.func @transform_1(%arg0: i32, %arg1: memref<1xi32, #tpu.memory_space<smem>>) -> (i32, i32) {
    %c0_i32 = arith.constant 0 : i32
    %c0_i32_0 = arith.constant 0 : i32
    return %arg0, %c0_i32 : i32, i32
  }
  func.func @transform_2(%arg0: i32, %arg1: memref<1xi32, #tpu.memory_space<smem>>) -> (i32, i32) {
    %c0_i32 = arith.constant 0 : i32
    %c0_i32_0 = arith.constant 0 : i32
    return %arg0, %c0_i32 : i32, i32
  }
}

</mosaic_0001>

<bundles_post_ra>
// kernel: tile.9
= control target key start
LH: loop header
LB: loop body
LE: loop exit
PB: predicated region body
PF: predicated region fallthrough
CT: control target
= control target key end

     0   :  { %vm36_vm0 = vcmask 1047556   ;;  %vm38_vm1 = vcmask 523264   ;;  %vm48_vm2 = vcmask 1048064   ;;  %s99_s0 = inlined_call_operand.vmem [shape: f32[8,2,64], index: 0, kind: input, shape index: {}]   ;;  %s100_s1 = inlined_call_operand.vmem [shape: f32[8,128], index: 1, kind: output, shape index: {}]  }
   0x1   :  { %v50_v0 = vld [vmem:[%s99_s0 + $0xe] sm:$0x3]  ;;  %v51_v1 = vld [vmem:[%s99_s0 + $0xc] sm:$0x3]  ;;  %v52_v2 = vld [vmem:[%s99_s0 + $0xa] sm:$0x3] }
   0x2   :  { %7 = vst [vmem:[#allocation0 + $0x38] sm:$0x3] %v50_v0  ;;  %v53_v3 = vld [vmem:[%s99_s0 + $0x8] sm:$0x3]  ;;  %v54_v4 = vld [vmem:[%s99_s0 + $0x6] sm:$0x3] }
   0x3   :  { %11 = vst [vmem:[#allocation0 + $0x30] sm:$0x3] %v51_v1  ;;  %v55_v5 = vld [vmem:[%s99_s0 + $0x4] sm:$0x3]  ;;  %v56_v6 = vld [vmem:[%s99_s0 + $0x2] sm:$0x3] }
   0x4   :  { %15 = vst [vmem:[#allocation0 + $0x28] sm:$0x3] %v52_v2  ;;  %v32_v7 = vld [vmem:[%s99_s0] sm:$0x3]  ;;  %s58_s0 = smov 64  }
   0x5   :  { %19 = vst [vmem:[#allocation0 + $0x20] sm:$0x3] %v53_v3 }
   0x6   :  { %23 = vst [vmem:[#allocation0 + $0x18] sm:$0x3] %v54_v4 }
   0x7   :  { %27 = vst [vmem:[#allocation0 + $0x10] sm:$0x3] %v55_v5 }
   0x8   :  { %31 = vst [vmem:[#allocation0 + $0x8] sm:$0x3] %v56_v6 }
   0x9   :  { %33 = vst [vmem:[#allocation0] sm:$0x3] %v32_v7 }
   0xc   :  { %v35_v8 = vld [vmem:[#allocation0] ss:$8 sm:$0xf0]   ;;  %v43_v9 = vld [vmem:[#allocation0 + $0x1] ss:$8 sm:$0xf0]  }
  0x10   :  { %v34_v10 = vld [vmem:[#allocation0] ss:$8 sm:$0xf]   ;;  %v41_v11 = vld [vmem:[#allocation0 + $0x1] ss:$8 sm:$0xf]  }
  0x11   :  { %v37_v12 = vsel %vm36_vm0, %v35_v8, %v34_v10  ;;  %v45_v13 = vsel %vm36_vm0, %v43_v9, %v41_v11 }
  0x12   :  { %46 = vrot.lane.b32.xlu0 %v45_v13, %s58_s0  ;;  %39 = vst.msk [vmem:[%s100_s1] sm:$0xff] %vm38_vm1, %v37_v12  }
  0x84   :  { %v47_v14 = vpop.permute.xlu0 %46  }
  0x85   :  { %49 = vst.msk [vmem:[%s100_s1] sm:$0xff] %vm48_vm2, %v47_v14  }

// kernel: positional_encoding.1
= control target key start
LH: loop header
LB: loop body
LE: loop exit
PB: predicated region body
PF: predicated region fallthrough
CT: control target
= control target key end

     0   :  { %v18_v0 = vlaneseq  ;;  %s77_s0 = inlined_call_operand.<no memory space> [shape: s32[1], index: 0, kind: input, shape index: {}]   ;;  %s78_s1 = inlined_call_operand.vmem [shape: f32[8,128], index: 1, kind: input, shape index: {}]   ;;  %s79_s2 = inlined_call_operand.vmem [shape: f32[8,128], index: 2, kind: input, shape index: {}]   ;;  %s80_s3 = inlined_call_operand.vmem [shape: f32[8,128], index: 3, kind: output, shape index: {}]  }
   0x1   :  { %v26_v4 = vstv %s77_s0  ;;  %v13_v9 = vld [vmem:[%s79_s2] sm:$0xff] }
   0x2   :  { %v19_v1 = vshrl.u32 %v18_v0, 7  ;;  %v21_v2 = vand.u32 127, %v18_v0  ;;  %v14_v10 = vld [vmem:[%s78_s1] sm:$0xff] }
   0x3   :  { %v15_v13 = vadd.f32 %v14_v10, %v13_v9 }
   0x4   :  { %v22_v3 = vmul.u32 128, %v19_v1 }
   0x5   :  { %v37_v16 = vmul.f32 1.25, %v15_v13 }
   0x6   :  { %v23_v5 = vadd.s32 %v22_v3, %v21_v2 }
   0x8   :  { %v27_v6 = vxor.u32 %v26_v4, %v23_v5 }
   0xa   :  { %v28_v7 = vmul.u32 2654435761, %v27_v6 }
   0xc   :  { %v29_v8 = vshrl.u32 %v28_v7, 16 }
   0xe   :  { %v30_v11 = vxor.u32 %v29_v8, %v28_v7 }
  0x10   :  { %v31_v12 = vmul.u32 2146121005, %v30_v11 }
  0x12   :  { %v32_v14 = vshrl.u32 %v31_v12, 15 }
  0x14   :  { %v33_v15 = vxor.u32 %v32_v14, %v31_v12 }
  0x16   :  { %v44_v17 = vxor.u32 2147483648, %v33_v15 }
  0x18   :  { %vm36_vm0 = vcmp.ge.s32.totalorder %v44_v17, 3006477107 }
  0x19   :  { %v38_v18 = vsel %vm36_vm0, %v37_v16, 0.0 }
  0x1a   :  { %39 = vst [vmem:[%s80_s3] sm:$0xff] %v38_v18 }

</bundles_post_ra>
